<compile_context>
chip_gen: v5e
topology: v5e:2x2
jax: 0.10.0
libtpu: 0.0.40
codegen_flags: <defaults>
</compile_context>

<pallas_src>
import jax
import jax.numpy as jnp
from jax.experimental import pallas as pl
from jax.experimental.pallas import tpu as pltpu


def _round_up(x, m):
    return ((x + m - 1) // m) * m


def _classify_kernel(x_ref, w1_ref, b1_ref, w2_ref, b2_ref, o_ref):
    """Fused 2-layer MLP head on one row-tile: relu(x @ W1 + b1) @ W2 + b2.

    x arrives in its original dtype and is cast to bf16 in-kernel (MXU-native);
    accumulation, bias add and ReLU are done in f32 on the VPU (v5e-safe).
    """
    x = x_ref[...].astype(jnp.bfloat16)                             # (TM, F)
    h = jnp.dot(x, w1_ref[...], preferred_element_type=jnp.float32)  # (TM, F) f32
    h = jnp.maximum(h + b1_ref[...], 0.0)
    y = jnp.dot(h.astype(jnp.bfloat16), w2_ref[...],
                preferred_element_type=jnp.float32)                  # (TM, OP) f32
    y = y + b2_ref[...]
    o_ref[...] = y.astype(o_ref.dtype)


def prepare_params(params, *, lane=128):
    """One-time prep (do at init / outside the per-step forward):
    cast weights to bf16 and zero-pad the class dim to a lane-dense multiple of
    128 so the output store is unmasked. Zero padding keeps the math exact; the
    padded logits columns are sliced off in classify_forward."""
    w1, b1, w2, b2 = params
    f = w1.shape[0]
    o = w2.shape[1]
    op = _round_up(o, lane)
    w1_p = w1.astype(jnp.bfloat16)                                    # (F, F)
    b1_p = b1.reshape(1, f).astype(jnp.float32)                       # (1, F)
    w2_p = jnp.zeros((f, op), jnp.bfloat16).at[:, :o].set(w2.astype(jnp.bfloat16))
    b2_p = jnp.zeros((1, op), jnp.float32).at[:, :o].set(
        b2.reshape(1, o).astype(jnp.float32))
    return (w1_p, b1_p, w2_p, b2_p, o)


def classify_forward(x, edge_index, prepped, *, tm_max=1024,
                     vmem_cap_bytes=56 * 1024 * 1024):
    """Pallas forward for Classify. edge_index is accepted but unused,
    matching the PyTorch module's signature."""
    del edge_index  # unused by the reference module
    w1_p, b1_p, w2_p, b2_p, o = prepped
    n, f = x.shape
    op = w2_p.shape[1]
    out_dtype = x.dtype
    out_itemsize = jnp.dtype(out_dtype).itemsize

    # Row tile: multiple of 16 (bf16 sublane packing), >= ~4 grid programs when
    # n is large enough (so v7x's two TensorCores both get work), capped by
    # tm_max (big tiles amortize the ~0.35us/step overhead on v5e/v6e).
    tm = min(tm_max,
             max(16, _round_up(pl.cdiv(n, 4), 16)),
             _round_up(n, 8))

    def footprint(tm_):
        # single-buffered resident weights/biases + double-buffered x/out tiles
        # + f32 intermediates.
        w_bytes = (w1_p.size * 2 + w2_p.size * 2 + b1_p.size * 4 + b2_p.size * 4)
        x_bytes = 2 * tm_ * f * x.dtype.itemsize
        out_bytes = 2 * tm_ * op * out_itemsize
        inter = tm_ * f * 4 + tm_ * op * 4
        return w_bytes + x_bytes + out_bytes + inter

    # Shrink the row tile if the footprint would blow past the (v7x-safe) cap.
    while tm > 16 and footprint(tm) > int(0.8 * vmem_cap_bytes):
        tm = max(16, _round_up(tm // 2, 16))

    grid = (pl.cdiv(n, tm),)
    vmem_limit = min(vmem_cap_bytes,
                     max(32 * 1024 * 1024, int(footprint(tm) * 1.3)))

    cost = pl.CostEstimate(
        flops=2 * n * f * f + 2 * n * f * op,
        transcendentals=0,
        bytes_accessed=(x.size * x.dtype.itemsize
                        + w1_p.size * 2 + w2_p.size * 2
                        + b1_p.size * 4 + b2_p.size * 4
                        + n * op * out_itemsize),
    )

    out_p = pl.pallas_call(
        _classify_kernel,
        grid=grid,
        in_specs=[
            # x: row-tiled; last block dim equals the full feature dim, so no
            # wrapper-side padding / extra HBM pass is needed.
            pl.BlockSpec((tm, f), lambda i: (i, 0)),
            # Weights/biases: whole-array, single-buffered, resident in VMEM.
            pl.BlockSpec(memory_space=pltpu.MemorySpace.VMEM),   # W1 (F, F)
            pl.BlockSpec(memory_space=pltpu.MemorySpace.VMEM),   # b1 (1, F)
            pl.BlockSpec(memory_space=pltpu.MemorySpace.VMEM),   # W2 (F, OP)
            pl.BlockSpec(memory_space=pltpu.MemorySpace.VMEM),   # b2 (1, OP)
        ],
        out_specs=pl.BlockSpec((tm, op), lambda i: (i, 0)),
        out_shape=jax.ShapeDtypeStruct((n, op), out_dtype),
        compiler_params=pltpu.CompilerParams(
            dimension_semantics=("parallel",),
            vmem_limit_bytes=vmem_limit,
        ),
        cost_estimate=cost,
    )(x, w1_p, b1_p, w2_p, b2_p)

    return out_p[:, :o]


def init_params(key, in_features, out_features):
    """Deterministic synthetic parameters matching MLP(in_features, out_features)."""
    k1, k2, k3, k4 = jax.random.split(key, 4)
    scale1 = 1.0 / jnp.sqrt(in_features)
    w1 = jax.random.uniform(k1, (in_features, in_features), jnp.float32,
                            -scale1, scale1)
    b1 = jax.random.uniform(k2, (1, in_features), jnp.float32, -scale1, scale1)
    scale2 = 1.0 / jnp.sqrt(in_features)
    w2 = jax.random.uniform(k3, (in_features, out_features), jnp.float32,
                            -scale2, scale2)
    b2 = jax.random.uniform(k4, (1, out_features), jnp.float32, -scale2, scale2)
    return (w1, b1, w2, b2)


def _reference_forward_bf16(x, params):
    """Mirrors the kernel's numerics: bf16 MXU operands, f32 accumulation."""
    w1, b1, w2, b2 = params
    xb = x.astype(jnp.bfloat16).astype(jnp.float32)
    w1b = w1.astype(jnp.bfloat16).astype(jnp.float32)
    w2b = w2.astype(jnp.bfloat16).astype(jnp.float32)
    h = jnp.maximum(xb @ w1b + b1, 0.0)
    hb = h.astype(jnp.bfloat16).astype(jnp.float32)
    return hb @ w2b + b2


if __name__ == "__main__":
    key = jax.random.PRNGKey(0)
    kx, kp, ke = jax.random.split(key, 3)

    num_nodes = 8        # N
    in_features = 32     # hidden dim of the graph features
    out_features = 8     # number of classes

    x = jax.random.normal(kx, (num_nodes, in_features), dtype=jnp.float32)
    # edge_index in PyG convention: [2, num_edges] int array (unused by forward)
    edge_index = jax.random.randint(ke, (2, 16), 0, num_nodes, dtype=jnp.int32)

    params = init_params(kp, in_features, out_features)
    prepped = prepare_params(params)   # one-time prep, hoisted out of forward

    out = classify_forward(x, edge_index, prepped)
    out = jax.block_until_ready(out)

    ref = _reference_forward_bf16(x, params)
    assert out.shape == (num_nodes, out_features)
    assert jnp.allclose(out, ref, atol=2e-3, rtol=2e-3)

    print("KERNEL_OK")
</pallas_src>

<mosaic_0001>
module attributes {stable_mosaic.version = 11 : i64} {
  func.func @_classify_kernel(%arg0: i32, %arg1: memref<8x32xf32, #tpu.memory_space<vmem>>, %arg2: memref<32x32xbf16, #tpu.memory_space<vmem>>, %arg3: memref<1x32xf32, #tpu.memory_space<vmem>>, %arg4: memref<32x128xbf16, #tpu.memory_space<vmem>>, %arg5: memref<1x128xf32, #tpu.memory_space<vmem>>, %arg6: memref<8x128xf32, #tpu.memory_space<vmem>>) attributes {dimension_semantics = [#tpu.dimension_semantics<parallel>], iteration_bounds = array<i64: 1>, scalar_prefetch = 0 : i64, scratch_operands = 0 : i64, tpu.core_type = #tpu.core_type<tc>, window_params = [{transform_indices = @transform_0, window_bounds = array<i64: 8, 32>}, {pipeline_mode = #tpu.pipeline_mode<synchronous>, transform_indices = @transform_1, window_bounds = array<i64: 32, 32>}, {pipeline_mode = #tpu.pipeline_mode<synchronous>, transform_indices = @transform_2, window_bounds = array<i64: 1, 32>}, {pipeline_mode = #tpu.pipeline_mode<synchronous>, transform_indices = @transform_3, window_bounds = array<i64: 32, 128>}, {pipeline_mode = #tpu.pipeline_mode<synchronous>, transform_indices = @transform_4, window_bounds = array<i64: 1, 128>}, {transform_indices = @transform_5, window_bounds = array<i64: 8, 128>}]} {
    %c0 = arith.constant 0 : index
    %c0_0 = arith.constant 0 : index
    %0 = vector.load %arg1[%c0, %c0_0] : memref<8x32xf32, #tpu.memory_space<vmem>>, vector<8x32xf32>
    %1 = arith.truncf %0 : vector<8x32xf32> to vector<8x32xbf16>
    %c0_1 = arith.constant 0 : index
    %c0_2 = arith.constant 0 : index
    %2 = vector.load %arg2[%c0_1, %c0_2] : memref<32x32xbf16, #tpu.memory_space<vmem>>, vector<32x32xbf16>
    %cst = arith.constant dense<0.000000e+00> : vector<8x32xf32>
    %3 = tpu.matmul %1, %2, %cst {dimension_numbers = #tpu.dot_dimension_numbers<[1], [0], [0], [1], [0, 0, 1, 1], [], []>} : vector<8x32xbf16>, vector<32x32xbf16>, vector<8x32xf32> -> vector<8x32xf32>
    %c0_3 = arith.constant 0 : index
    %c0_4 = arith.constant 0 : index
    %4 = vector.load %arg3[%c0_3, %c0_4] : memref<1x32xf32, #tpu.memory_space<vmem>>, vector<1x32xf32>
    %5 = vector.broadcast %4 : vector<1x32xf32> to vector<8x32xf32>
    %6 = arith.addf %3, %5 : vector<8x32xf32>
    %cst_5 = arith.constant 0.000000e+00 : f32
    %7 = vector.broadcast %cst_5 : f32 to vector<8x32xf32>
    %8 = arith.maximumf %6, %7 : vector<8x32xf32>
    %9 = arith.truncf %8 : vector<8x32xf32> to vector<8x32xbf16>
    %c0_6 = arith.constant 0 : index
    %c0_7 = arith.constant 0 : index
    %10 = vector.load %arg4[%c0_6, %c0_7] : memref<32x128xbf16, #tpu.memory_space<vmem>>, vector<32x128xbf16>
    %cst_8 = arith.constant dense<0.000000e+00> : vector<8x128xf32>
    %11 = tpu.matmul %9, %10, %cst_8 {dimension_numbers = #tpu.dot_dimension_numbers<[1], [0], [0], [1], [0, 0, 1, 1], [], []>} : vector<8x32xbf16>, vector<32x128xbf16>, vector<8x128xf32> -> vector<8x128xf32>
    %c0_9 = arith.constant 0 : index
    %c0_10 = arith.constant 0 : index
    %12 = vector.load %arg5[%c0_9, %c0_10] : memref<1x128xf32, #tpu.memory_space<vmem>>, vector<1x128xf32>
    %13 = vector.broadcast %12 : vector<1x128xf32> to vector<8x128xf32>
    %14 = arith.addf %11, %13 : vector<8x128xf32>
    %c0_11 = arith.constant 0 : index
    %c0_12 = arith.constant 0 : index
    %15 = vector.load %arg6[%c0_11, %c0_12] : memref<8x128xf32, #tpu.memory_space<vmem>>, vector<8x128xf32>
    tpu.vector_store %arg6[%c0_11, %c0_12], %14 {strides = array<i32>} : memref<8x128xf32, #tpu.memory_space<vmem>>, vector<8x128xf32>,
    return
  }
  func.func @transform_0(%arg0: i32) -> (i32, i32) {
    %c0_i32 = arith.constant 0 : i32
    %c0_i32_0 = arith.constant 0 : i32
    return %arg0, %c0_i32 : i32, i32
  }
  func.func @transform_1(%arg0: i32) -> (i32, i32) {
    %c0_i32 = arith.constant 0 : i32
    %c0_i32_0 = arith.constant 0 : i32
    %c0_i32_1 = arith.constant 0 : i32
    return %c0_i32, %c0_i32_0 : i32, i32
  }
  func.func @transform_2(%arg0: i32) -> (i32, i32) {
    %c0_i32 = arith.constant 0 : i32
    %c0_i32_0 = arith.constant 0 : i32
    %c0_i32_1 = arith.constant 0 : i32
    return %c0_i32, %c0_i32_0 : i32, i32
  }
  func.func @transform_3(%arg0: i32) -> (i32, i32) {
    %c0_i32 = arith.constant 0 : i32
    %c0_i32_0 = arith.constant 0 : i32
    %c0_i32_1 = arith.constant 0 : i32
    return %c0_i32, %c0_i32_0 : i32, i32
  }
  func.func @transform_4(%arg0: i32) -> (i32, i32) {
    %c0_i32 = arith.constant 0 : i32
    %c0_i32_0 = arith.constant 0 : i32
    %c0_i32_1 = arith.constant 0 : i32
    return %c0_i32, %c0_i32_0 : i32, i32
  }
  func.func @transform_5(%arg0: i32) -> (i32, i32) {
    %c0_i32 = arith.constant 0 : i32
    %c0_i32_0 = arith.constant 0 : i32
    return %arg0, %c0_i32 : i32, i32
  }
}

</mosaic_0001>

<bundles_post_ra>
// kernel: tpu_custom_call.1
= control target key start
LH: loop header
LB: loop body
LE: loop exit
PB: predicated region body
PF: predicated region fallthrough
CT: control target
= control target key end

     0   :  { %10 = vsyncpa [#allocation3], 0  ;;  %s349_s0 = inlined_call_operand.hbm [shape: f32[8,32], index: 0, kind: input, shape index: {}]   ;;  %s350_s1 = inlined_call_operand.hbm [shape: bf16[32,32], index: 1, kind: input, shape index: {}]   ;;  %s351_s2 = inlined_call_operand.vmem [shape: f32[1,32], index: 2, kind: input, shape index: {}]   ;;  %s352_s3 = inlined_call_operand.hbm [shape: bf16[32,128], index: 3, kind: input, shape index: {}]   ;;  %s353_s4 = inlined_call_operand.vmem [shape: f32[1,128], index: 4, kind: input, shape index: {}]   ;;  %s354_s5 = inlined_call_operand.hbm [shape: f32[8,128], index: 5, kind: output, shape index: {}]  }
   0x1   :  { %11 = vsyncpa [#allocation6], 0  ;;  %s28_s20 = sshll.u32 %s350_s1, 4  ;;  %s29_s20 = int_to_ptr.hbm [resolvable:$true] %s28_s20 }
   0x2   :  { %12 = vsyncpa [#allocation4], 0  ;;  %s295_s21 = smov [#allocation5]   ;;  %s18_s25 = sshll.u32 %s349_s0, 4  ;;  %s19_s25 = int_to_ptr.hbm [resolvable:$true] %s18_s25 }
   0x3   :  { %s30_s22 = sshll.u32 %s295_s21, 4  ;;  %s296_s26 = smov 64   ;;  %s31_s22 = int_to_ptr.vmem [resolvable:$true] %s30_s22 }
   0x4   :  { %s297_s27 = smov 4   ;;  %s298_s28 = smov [#allocation2]  }
   0x5   :  { %36 = dma.hbm_to_vmem [thread:$0]  %s29_s20, 256, %s31_s22, [#allocation6], %s296_s26, %s296_s26, %s297_s27  }
   0x6   :  { %s20_s29 = sshll.u32 %s298_s28, 4  ;;  %s43_s7 = sshll.u32 %s352_s3, 4  ;;  %s21_s29 = int_to_ptr.vmem [resolvable:$true] %s20_s29  ;;  %s44_s7 = int_to_ptr.hbm [resolvable:$true] %s43_s7 }
   0x7   :  { %23 = dma.hbm_to_vmem [thread:$0]  %s19_s25, 128, %s21_s29, [#allocation3]  }
   0x8   :  { %s299_s1 = smov [#allocation7]  }
   0x9   :  { %s45_s8 = sshll.u32 %s299_s1, 4  ;;  %s46_s8 = int_to_ptr.vmem [resolvable:$true] %s45_s8 }
   0xa   :  { %51 = dma.hbm_to_vmem [thread:$0]  %s44_s7, 256, %s46_s8, [#allocation6], %s296_s26, %s296_s26, %s297_s27  }
   0xb   :  { %289 = dma.done.wait [#allocation3], 128  }
   0xc   :  { %290 = vsyncadd [#allocation3], 4294967168 }
   0xd   :  { %291 = dma.done.wait [#allocation6], 512  }
   0xe   :  { %292 = vsyncadd [#allocation6], 4294966784  ;;  %v182_v0 = vld [vmem:[#allocation5 + $0x8] sm:$0xff]  ;;  %v181_v1 = vld [vmem:[#allocation5] sm:$0xff]  ;;  %vm89_vm0 = vcmask 261120   ;;  %s300_s11 = smov [#allocation8]  }
   0xf   :  { %99 = vmatpush.bf16.msra.mxu0 %v182_v0  ;;  %v67_v2 = vld [vmem:[#allocation2] sm:$0xff]  ;;  %v183_v5 = vld [vmem:[#allocation7] sm:$0xff]  ;;  %s150_s12 = sshll.u32 %s300_s11, 4  ;;  %s152_s15 = sshll.u32 %s354_s5, 4  ;;  %s151_s12 = int_to_ptr.vmem [resolvable:$true] %s150_s12  ;;  %s153_s15 = int_to_ptr.hbm [resolvable:$true] %s152_s15 }
  0x10   :  { %v68_v3 = vpack.c.bf16 %v67_v2, %v67_v2  ;;  %v184_v4 = vld [vmem:[#allocation7 + $0x8] sm:$0xff] }
  0x11   :  { %137 = vmatpush.bf16.msra.mxu1 %v184_v4  ;;  %v191_v6 = vld [vmem:[%s351_s2] ss:$0 sm:$0xff] }
  0x12   :  { %v192_v12 = vld [vmem:[%s353_s4] ss:$0 sm:$0xff] }
  0x13   :  { %100 = vmatpush.bf16.msra.mxu0 %v181_v1 }
  0x15   :  { %138 = vmatpush.bf16.msra.mxu1 %v183_v5 }
  0x16   :  { %171 = vmatmul.msk.bf16.vlgmr.msra.gmra.mxu0 %vm89_vm0, %v68_v3 }
  0x93   :  { %v102_v7 = vpop.f32.mrf.mxu0 }
  0x94   :  { %v103_v8 = vadd.f32 %v191_v6, %v102_v7 }
  0x96   :  { %v106_v9 = vmax.f32 %v103_v8, 0.0 }
  0x98   :  { %v107_v10 = vpack.c.bf16 %v106_v9, %v106_v9 }
  0x9a   :  { %180 = vmatmul.msk.bf16.vlgmr.msra.gmra.mxu1 %vm89_vm0, %v107_v10 }
  0x9b   :  { %v104_v11 = vpop.f32.mrf.mxu0 }
 0x117   :  { %v140_v13 = vpop.f32.mrf.mxu1 }
 0x118   :  { %v141_v14 = vadd.f32 %v192_v12, %v140_v13 }
 0x11a   :  { %144 = vst [vmem:[#allocation8] sm:$0xff] %v141_v14 }
 0x11b   :  { %155 = dma.vmem_to_hbm [thread:$0]  %s151_s12, 128, %s153_s15, [#allocation4]  }
 0x11f   :  { %v142_v15 = vpop.f32.mrf.mxu1 }
 0x120   :  { %293 = dma.done.wait [#allocation4], 128  }
 0x121   :  { %294 = vsyncadd [#allocation4], 4294967168 }
 0x122   :  { %160 = vsyncpa [#allocation3], 1 }
 0x123   :  { %161 = vsyncpa [#allocation6], 1 }
 0x124   :  { %162 = vsyncpa [#allocation4], 1 }

</bundles_post_ra>
